<compile_context>
chip_gen: v5e
topology: v5e:2x2
jax: 0.10.0
libtpu: 0.0.40
codegen_flags: <defaults>
</compile_context>

<pallas_src>
import math
import functools

import jax
import jax.numpy as jnp
from jax.experimental import pallas as pl
from jax.experimental.pallas import tpu as pltpu


def _gsa_kernel(roi_ref, mb_ref, wqkT_ref, bqk_ref, hmask_ref, wbd_ref, bout_ref,
                out_ref, *, num_heads, nongt_rows):
    """Graph self-attention for one block of batch items (all refs are VMEM tiles)."""
    H = num_heads
    M = nongt_rows
    Bblk, N, D = roi_ref.shape
    dg = D // H
    scale = jnp.float32(1.0 / math.sqrt(float(dg)))

    roi = roi_ref[...]                                    # (Bblk, N, D)
    v = roi[:, :M, :]                                     # (Bblk, M, D) values, no HBM dup

    # Fused q/k projection: ONE (Bblk*N, D) @ (D, 2D) MXU matmul (FCNet == weight-normed
    # linear; eval-mode dropout = identity; weights pre-transposed/concatenated on host).
    qk = jnp.dot(roi.reshape(Bblk * N, D), wqkT_ref[...],
                 preferred_element_type=jnp.float32) + bqk_ref[...]          # (Bblk*N, 2D)
    q = qk[:, :D].reshape(Bblk, N, D)                                        # (Bblk, N, D)
    k = qk[:, D:].reshape(Bblk, N, D)[:, :M, :]                              # (Bblk, M, D)

    # Head-expanded queries, h-major rows: row h*N + n holds q_n masked to head-h feature
    # lanes (host-precomputed (H*N, D) mask), so a single full-D batched matmul computes
    # every per-head affinity.  dg=8 is too shallow to feed the MXU on its own.
    qe = jnp.tile(q, (1, H, 1)) * hmask_ref[...][None]                       # (Bblk, H*N, D)

    aff = jnp.einsum('brd,bmd->brm', qe, k,
                     preferred_element_type=jnp.float32)                     # (Bblk, H*N, M)

    # merged adjacency-mask + label-bias (where(adj>0, bias, NEG)), broadcast over heads.
    logits = aff.reshape(Bblk, H, N, M) * scale + mb_ref[...][:, None, :, :]

    # softmax over the nongt axis; masked columns carry ~-9e15 and underflow to exactly 0.
    mmax = jnp.max(logits, axis=-1, keepdims=True)
    e = jnp.exp(logits - mmax)
    attn = e * pl.reciprocal(jnp.sum(e, axis=-1, keepdims=True), approx=True)

    # attention-weighted values.
    ot = jnp.einsum('brm,bmd->brd', attn.reshape(Bblk, H * N, M), v,
                    preferred_element_type=jnp.float32)                      # (Bblk, H*N, D)

    # pack heads onto lanes: (Bblk,H,N,D) -> (Bblk,N,H*D); grouped 1x1 conv is then ONE
    # block-diagonal (Bblk*N, H*D=128) @ (H*D, D) matmul.
    ot_cat = jnp.transpose(ot.reshape(Bblk, H, N, D), (0, 2, 1, 3)).reshape(Bblk * N, H * D)
    out = jnp.dot(ot_cat, wbd_ref[...],
                  preferred_element_type=jnp.float32) + bout_ref[...]        # (Bblk*N, D)

    out_ref[...] = out.astype(out_ref.dtype)


def graph_self_attention(roi_feat, adj_matrix, label_biases_att, params,
                         num_heads=4, nongt_dim=20, batch_block=None):
    B, N, D = roi_feat.shape
    H = num_heads
    assert D % H == 0
    dg = D // H
    M = min(nongt_dim, N)
    assert adj_matrix.shape == (B, N, M)
    assert label_biases_att.shape == (B, N, M)

    f32 = jnp.float32
    NEG = jnp.float32(-9000000000000000.0)
    roi_feat = roi_feat.astype(f32)

    # ---- batch-block heuristic ------------------------------------------------------
    # >= 2 grid steps => DMA/compute overlap and work for both v7x TensorCores; within
    # that, keep the largest block whose double-buffered streams stay well under the
    # scoped-VMEM limit on every generation (v7x has only 64 MiB physical).
    if batch_block is None:
        def step_bytes(bb):                       # double-buffered roi + maskbias + out
            return 2 * 4 * bb * N * (2 * D + M)
        want_steps = min(2, B)
        Bblk = 1
        for cand in range(B, 0, -1):
            if B % cand == 0 and B // cand >= want_steps and step_bytes(cand) <= (8 << 20):
                Bblk = cand
                break
    else:
        Bblk = batch_block
    assert B % Bblk == 0
    grid = (B // Bblk,)

    # ---- host-side prep (layout / constant folding only) ----------------------------
    # merged mask + bias: masked entries become aff*scale + NEG in-kernel, which softmaxes
    # to exactly 0 just like the reference's where(adj>0, aff, NEG) + bias.
    maskbias = jnp.where(adj_matrix.astype(f32) > 0,
                         label_biases_att.astype(f32), NEG)                  # (B, N, M)

    wqkT = jnp.concatenate([params["wq"].T.astype(f32),
                            params["wk"].T.astype(f32)], axis=1)             # (D, 2D)
    bqk = jnp.concatenate([params["bq"].reshape(1, D),
                           params["bk"].reshape(1, D)], axis=1).astype(f32)  # (1, 2D)
    bout = params["bout"].reshape(1, D).astype(f32)

    # head-row mask: row h*N + n is 1 on head-h feature lanes.
    hmask = jnp.kron(jnp.eye(H, dtype=f32), jnp.ones((1, dg), f32))          # (H, D)
    hmask_rows = jnp.repeat(hmask, N, axis=0)                                # (H*N, D)

    # block-diagonal grouped-1x1-conv weight: w_bd[h*D+c, h*dg+g] = wout[h*dg+g, c].
    wout = params["wout"].astype(f32)
    w_bd = jnp.zeros((H * D, D), f32)
    for h in range(H):
        w_bd = w_bd.at[h * D:(h + 1) * D, h * dg:(h + 1) * dg].set(
            wout[h * dg:(h + 1) * dg, :].T)

    kernel = functools.partial(_gsa_kernel, num_heads=H, nongt_rows=M)

    flops = (2 * B * N * D * (2 * D)          # fused q/k projection
             + 2 * B * H * N * M * D          # affinities
             + 2 * B * H * N * M * D          # attn @ v
             + 2 * B * N * (H * D) * D)       # block-diagonal output projection
    bytes_accessed = 4 * (2 * B * N * D + B * N * M          # roi in, out, maskbias
                          + 2 * D * D + 2 * D + H * N * D + H * D * D + D)
    cost = pl.CostEstimate(flops=flops, transcendentals=B * H * N * M,
                           bytes_accessed=bytes_accessed)

    grid_spec = pltpu.PrefetchScalarGridSpec(
        num_scalar_prefetch=0,
        grid=grid,
        in_specs=[
            pl.BlockSpec((Bblk, N, D), lambda b: (b, 0, 0)),     # roi_feat
            pl.BlockSpec((Bblk, N, M), lambda b: (b, 0, 0)),     # merged mask+bias (untiled)
            pl.BlockSpec((D, 2 * D), lambda b: (0, 0)),          # [wq^T | wk^T]
            pl.BlockSpec((1, 2 * D), lambda b: (0, 0)),          # [bq | bk]
            pl.BlockSpec((H * N, D), lambda b: (0, 0)),          # head-row mask
            pl.BlockSpec((H * D, D), lambda b: (0, 0)),          # block-diag out weight
            pl.BlockSpec((1, D), lambda b: (0, 0)),              # out bias
        ],
        out_specs=pl.BlockSpec((Bblk * N, D), lambda b: (b, 0)),
    )

    out = pl.pallas_call(
        kernel,
        out_shape=jax.ShapeDtypeStruct((B * N, D), f32),
        grid_spec=grid_spec,
        compiler_params=pltpu.CompilerParams(
            dimension_semantics=("parallel",),
            vmem_limit_bytes=64 * 1024 * 1024,
        ),
        cost_estimate=cost,
    )(roi_feat, maskbias, wqkT, bqk, hmask_rows, w_bd, bout)

    return out.reshape(B, N, D)


def reference(roi, adj, bias, params, H, nongt_dim):
    """Pure-JAX transcription of the PyTorch forward (eval mode)."""
    B, N, D = roi.shape
    M = min(nongt_dim, N)
    dg = D // H
    nongt_feat = roi[:, :M, :]
    q = roi @ params["wq"].T + params["bq"]
    k = nongt_feat @ params["wk"].T + params["bk"]
    qb = q.reshape(B, N, H, dg).transpose(0, 2, 1, 3)          # (B,H,N,dg)
    kb = k.reshape(B, M, H, dg).transpose(0, 2, 1, 3)          # (B,H,M,dg)
    aff = jnp.matmul(qb, kb.transpose(0, 1, 3, 2)) * (1.0 / math.sqrt(float(dg)))
    aff = aff.transpose(0, 2, 1, 3)                            # (B,N,H,M)
    aff_t = aff.transpose(0, 1, 3, 2)                          # (B,N,M,H)
    masked = jnp.where(adj[..., None] > 0, aff_t, -9000000000000000.0) + bias[..., None]
    wa = masked.transpose(0, 1, 3, 2)                          # (B,N,H,M)
    attn = jax.nn.softmax(wa, axis=3)
    out_t = jnp.matmul(attn.reshape(B, N * H, M), nongt_feat)  # (B,N*H,D)
    out_t = out_t.reshape(B * N, H, D)
    wout = params["wout"].reshape(H, dg, D)
    proj = jnp.einsum("bhd,hgd->bhg", out_t, wout).reshape(B * N, D) + params["bout"]
    return proj.reshape(B, N, D)


if __name__ == "__main__":
    B, N, D, H, NONGT = 2, 16, 32, 4, 20
    M = min(NONGT, N)

    key = jax.random.PRNGKey(0)
    k1, k2, k3, k4, k5, k6, k7, k8, k9 = jax.random.split(key, 9)

    roi = jax.random.normal(k1, (B, N, D), jnp.float32)
    adj = (jax.random.uniform(k2, (B, N, M)) > 0.5).astype(jnp.float32)
    adj = adj.at[:, :, 0].set(1.0)  # ensure at least one valid neighbor per row
    bias = jax.random.normal(k3, (B, N, M), jnp.float32) * 0.1

    params = {
        "wq":   jax.random.normal(k4, (D, D), jnp.float32) * 0.1,
        "bq":   jax.random.normal(k5, (1, D), jnp.float32) * 0.01,
        "wk":   jax.random.normal(k6, (D, D), jnp.float32) * 0.1,
        "bk":   jax.random.normal(k7, (1, D), jnp.float32) * 0.01,
        "wout": jax.random.normal(k8, (D, D), jnp.float32) * 0.1,  # Conv2d weight [D, D, 1, 1] squeezed
        "bout": jax.random.normal(k9, (1, D), jnp.float32) * 0.01,
    }

    out = graph_self_attention(roi, adj, bias, params, num_heads=H, nongt_dim=NONGT)
    out = jax.block_until_ready(out)

    ref = reference(roi, adj, bias, params, H, NONGT)
    err = float(jnp.max(jnp.abs(out - ref)))
    assert out.shape == (B, N, D)
    # f32 everywhere; slight slack over 1e-4 only for the EUP approximate reciprocal
    assert err < 2e-3, f"max abs err {err}"
    print("KERNEL_OK")
</pallas_src>

<mosaic_0001>
module attributes {stable_mosaic.version = 11 : i64} {
  func.func @_gsa_kernel(%arg0: i32, %arg1: memref<1x16x32xf32, #tpu.memory_space<vmem>>, %arg2: memref<1x16x16xf32, #tpu.memory_space<vmem>>, %arg3: memref<32x64xf32, #tpu.memory_space<vmem>>, %arg4: memref<1x64xf32, #tpu.memory_space<vmem>>, %arg5: memref<64x32xf32, #tpu.memory_space<vmem>>, %arg6: memref<128x32xf32, #tpu.memory_space<vmem>>, %arg7: memref<1x32xf32, #tpu.memory_space<vmem>>, %arg8: memref<16x32xf32, #tpu.memory_space<vmem>>) attributes {dimension_semantics = [#tpu.dimension_semantics<parallel>], iteration_bounds = array<i64: 2>, scalar_prefetch = 0 : i64, scratch_operands = 0 : i64, tpu.core_type = #tpu.core_type<tc>, window_params = [{transform_indices = @transform_0, window_bounds = array<i64: 1, 16, 32>}, {transform_indices = @transform_1, window_bounds = array<i64: 1, 16, 16>}, {pipeline_mode = #tpu.pipeline_mode<synchronous>, transform_indices = @transform_2, window_bounds = array<i64: 32, 64>}, {pipeline_mode = #tpu.pipeline_mode<synchronous>, transform_indices = @transform_3, window_bounds = array<i64: 1, 64>}, {pipeline_mode = #tpu.pipeline_mode<synchronous>, transform_indices = @transform_4, window_bounds = array<i64: 64, 32>}, {pipeline_mode = #tpu.pipeline_mode<synchronous>, transform_indices = @transform_5, window_bounds = array<i64: 128, 32>}, {pipeline_mode = #tpu.pipeline_mode<synchronous>, transform_indices = @transform_6, window_bounds = array<i64: 1, 32>}, {transform_indices = @transform_7, window_bounds = array<i64: 16, 32>}]} {
    %c0 = arith.constant 0 : index
    %c0_0 = arith.constant 0 : index
    %c0_1 = arith.constant 0 : index
    %0 = vector.load %arg1[%c0, %c0_0, %c0_1] : memref<1x16x32xf32, #tpu.memory_space<vmem>>, vector<1x16x32xf32>
    %1 = vector.shape_cast %0 : vector<1x16x32xf32> to vector<16x32xf32>
    %c0_2 = arith.constant 0 : index
    %c0_3 = arith.constant 0 : index
    %2 = vector.load %arg3[%c0_2, %c0_3] : memref<32x64xf32, #tpu.memory_space<vmem>>, vector<32x64xf32>
    %cst = arith.constant dense<0.000000e+00> : vector<16x64xf32>
    %3 = tpu.matmul %1, %2, %cst {dimension_numbers = #tpu.dot_dimension_numbers<[1], [0], [0], [1], [0, 0, 1, 1], [], []>} : vector<16x32xf32>, vector<32x64xf32>, vector<16x64xf32> -> vector<16x64xf32>
    %c0_4 = arith.constant 0 : index
    %c0_5 = arith.constant 0 : index
    %4 = vector.load %arg4[%c0_4, %c0_5] : memref<1x64xf32, #tpu.memory_space<vmem>>, vector<1x64xf32>
    %5 = vector.broadcast %4 : vector<1x64xf32> to vector<16x64xf32>
    %6 = arith.addf %3, %5 : vector<16x64xf32>
    %7 = vector.extract_strided_slice %6 {offsets = [0, 0], sizes = [16, 32], strides = [1, 1]} : vector<16x64xf32> to vector<16x32xf32>
    %8 = vector.shape_cast %7 : vector<16x32xf32> to vector<1x16x32xf32>
    %9 = vector.extract_strided_slice %6 {offsets = [0, 32], sizes = [16, 32], strides = [1, 1]} : vector<16x64xf32> to vector<16x32xf32>
    %10 = vector.shape_cast %9 : vector<16x32xf32> to vector<1x16x32xf32>
    %11 = tpu.concatenate %8, %8, %8, %8 in 1 : vector<1x16x32xf32>, vector<1x16x32xf32>, vector<1x16x32xf32>, vector<1x16x32xf32> -> vector<1x64x32xf32>
    %c0_6 = arith.constant 0 : index
    %c0_7 = arith.constant 0 : index
    %12 = vector.load %arg5[%c0_6, %c0_7] : memref<64x32xf32, #tpu.memory_space<vmem>>, vector<64x32xf32>
    %13 = vector.shape_cast %12 : vector<64x32xf32> to vector<1x64x32xf32>
    %14 = arith.mulf %11, %13 : vector<1x64x32xf32>
    "tpu.trace_start"() <{level = 10 : i32, message = "brd,bmd->brm"}> : () -> ()
    %cst_8 = arith.constant dense<0.000000e+00> : vector<1x64x16xf32>
    %15 = tpu.matmul %14, %10, %cst_8 {dimension_numbers = #tpu.dot_dimension_numbers<[2], [2], [1], [1], [0, 0, 0, 1, 1, 1], [0], [0]>} : vector<1x64x32xf32>, vector<1x16x32xf32>, vector<1x64x16xf32> -> vector<1x64x16xf32>
    "tpu.trace_stop"() : () -> ()
    %16 = vector.shape_cast %15 : vector<1x64x16xf32> to vector<1x4x16x16xf32>
    %cst_9 = arith.constant 0.353553385 : f32
    %17 = vector.broadcast %cst_9 : f32 to vector<1x4x16x16xf32>
    %18 = arith.mulf %16, %17 : vector<1x4x16x16xf32>
    %c0_10 = arith.constant 0 : index
    %c0_11 = arith.constant 0 : index
    %c0_12 = arith.constant 0 : index
    %19 = vector.load %arg2[%c0_10, %c0_11, %c0_12] : memref<1x16x16xf32, #tpu.memory_space<vmem>>, vector<1x16x16xf32>
    %20 = vector.shape_cast %19 : vector<1x16x16xf32> to vector<1x1x16x16xf32>
    %21 = vector.broadcast %20 : vector<1x1x16x16xf32> to vector<1x4x16x16xf32>
    %22 = arith.addf %18, %21 : vector<1x4x16x16xf32>
    %cst_13 = arith.constant dense<0xFF800000> : vector<1x4x16xf32>
    %23 = vector.multi_reduction <maximumf>, %22, %cst_13 [3] : vector<1x4x16x16xf32> to vector<1x4x16xf32>
    %24 = vector.shape_cast %23 : vector<1x4x16xf32> to vector<1x4x16x1xf32>
    %25 = vector.broadcast %24 : vector<1x4x16x1xf32> to vector<1x4x16x16xf32>
    %26 = arith.subf %22, %25 : vector<1x4x16x16xf32>
    %27 = math.exp %26 : vector<1x4x16x16xf32>
    %cst_14 = arith.constant dense<0.000000e+00> : vector<1x4x16xf32>
    %28 = vector.multi_reduction <add>, %27, %cst_14 [3] : vector<1x4x16x16xf32> to vector<1x4x16xf32>
    %29 = vector.shape_cast %28 : vector<1x4x16xf32> to vector<1x4x16x1xf32>
    %30 = tpu.reciprocal %29 {approx = true} : vector<1x4x16x1xf32> -> vector<1x4x16x1xf32>
    %31 = vector.broadcast %30 : vector<1x4x16x1xf32> to vector<1x4x16x16xf32>
    %32 = arith.mulf %27, %31 : vector<1x4x16x16xf32>
    %33 = vector.shape_cast %32 : vector<1x4x16x16xf32> to vector<1x64x16xf32>
    "tpu.trace_start"() <{level = 10 : i32, message = "brm,bmd->brd"}> : () -> ()
    %cst_15 = arith.constant dense<0.000000e+00> : vector<1x64x32xf32>
    %34 = tpu.matmul %33, %0, %cst_15 {dimension_numbers = #tpu.dot_dimension_numbers<[2], [1], [1], [2], [0, 0, 0, 1, 1, 2], [0], [0]>} : vector<1x64x16xf32>, vector<1x16x32xf32>, vector<1x64x32xf32> -> vector<1x64x32xf32>
    "tpu.trace_stop"() : () -> ()
    %35 = vector.shape_cast %34 : vector<1x64x32xf32> to vector<1x4x16x32xf32>
    %36 = tpu.transpose %35, [0, 2, 1, 3] : vector<1x4x16x32xf32> -> vector<1x16x4x32xf32>
    %37 = vector.shape_cast %36 : vector<1x16x4x32xf32> to vector<16x128xf32>
    %c0_16 = arith.constant 0 : index
    %c0_17 = arith.constant 0 : index
    %38 = vector.load %arg6[%c0_16, %c0_17] : memref<128x32xf32, #tpu.memory_space<vmem>>, vector<128x32xf32>
    %cst_18 = arith.constant dense<0.000000e+00> : vector<16x32xf32>
    %39 = tpu.matmul %37, %38, %cst_18 {dimension_numbers = #tpu.dot_dimension_numbers<[1], [0], [0], [1], [0, 0, 1, 1], [], []>} : vector<16x128xf32>, vector<128x32xf32>, vector<16x32xf32> -> vector<16x32xf32>
    %c0_19 = arith.constant 0 : index
    %c0_20 = arith.constant 0 : index
    %40 = vector.load %arg7[%c0_19, %c0_20] : memref<1x32xf32, #tpu.memory_space<vmem>>, vector<1x32xf32>
    %41 = vector.broadcast %40 : vector<1x32xf32> to vector<16x32xf32>
    %42 = arith.addf %39, %41 : vector<16x32xf32>
    %c0_21 = arith.constant 0 : index
    %c0_22 = arith.constant 0 : index
    %43 = vector.load %arg8[%c0_21, %c0_22] : memref<16x32xf32, #tpu.memory_space<vmem>>, vector<16x32xf32>
    tpu.vector_store %arg8[%c0_21, %c0_22], %42 {strides = array<i32>} : memref<16x32xf32, #tpu.memory_space<vmem>>, vector<16x32xf32>,
    return
  }
  func.func @transform_0(%arg0: i32) -> (i32, i32, i32) {
    %c0_i32 = arith.constant 0 : i32
    %c0_i32_0 = arith.constant 0 : i32
    %c0_i32_1 = arith.constant 0 : i32
    return %arg0, %c0_i32, %c0_i32_0 : i32, i32, i32
  }
  func.func @transform_1(%arg0: i32) -> (i32, i32, i32) {
    %c0_i32 = arith.constant 0 : i32
    %c0_i32_0 = arith.constant 0 : i32
    %c0_i32_1 = arith.constant 0 : i32
    return %arg0, %c0_i32, %c0_i32_0 : i32, i32, i32
  }
  func.func @transform_2(%arg0: i32) -> (i32, i32) {
    %c0_i32 = arith.constant 0 : i32
    %c0_i32_0 = arith.constant 0 : i32
    %c0_i32_1 = arith.constant 0 : i32
    return %c0_i32, %c0_i32_0 : i32, i32
  }
  func.func @transform_3(%arg0: i32) -> (i32, i32) {
    %c0_i32 = arith.constant 0 : i32
    %c0_i32_0 = arith.constant 0 : i32
    %c0_i32_1 = arith.constant 0 : i32
    return %c0_i32, %c0_i32_0 : i32, i32
  }
  func.func @transform_4(%arg0: i32) -> (i32, i32) {
    %c0_i32 = arith.constant 0 : i32
    %c0_i32_0 = arith.constant 0 : i32
    %c0_i32_1 = arith.constant 0 : i32
    return %c0_i32, %c0_i32_0 : i32, i32
  }
  func.func @transform_5(%arg0: i32) -> (i32, i32) {
    %c0_i32 = arith.constant 0 : i32
    %c0_i32_0 = arith.constant 0 : i32
    %c0_i32_1 = arith.constant 0 : i32
    return %c0_i32, %c0_i32_0 : i32, i32
  }
  func.func @transform_6(%arg0: i32) -> (i32, i32) {
    %c0_i32 = arith.constant 0 : i32
    %c0_i32_0 = arith.constant 0 : i32
    %c0_i32_1 = arith.constant 0 : i32
    return %c0_i32, %c0_i32_0 : i32, i32
  }
  func.func @transform_7(%arg0: i32) -> (i32, i32) {
    %c0_i32 = arith.constant 0 : i32
    %c0_i32_0 = arith.constant 0 : i32
    return %arg0, %c0_i32 : i32, i32
  }
}

</mosaic_0001>

<bundles_post_ra>
// kernel: tpu_custom_call.1
= control target key start
LH: loop header
LB: loop body
LE: loop exit
PB: predicated region body
PF: predicated region fallthrough
CT: control target
= control target key end

     0   :  { %12 = vsyncpa [#allocation3], 0  ;;  %s1536_s0 = inlined_call_operand.vmem [shape: f32[2,16,32], index: 0, kind: input, shape index: {}]   ;;  %s1537_s1 = inlined_call_operand.vmem [shape: f32[2,16,16], index: 1, kind: input, shape index: {}]   ;;  %s1538_s2 = inlined_call_operand.vmem [shape: f32[32,64], index: 2, kind: input, shape index: {}]   ;;  %s1539_s3 = inlined_call_operand.vmem [shape: f32[1,64], index: 3, kind: input, shape index: {}]   ;;  %s1540_s4 = inlined_call_operand.vmem [shape: f32[64,32], index: 4, kind: input, shape index: {}]   ;;  %s1541_s5 = inlined_call_operand.vmem [shape: f32[128,32], index: 5, kind: input, shape index: {}]   ;;  %s1542_s6 = inlined_call_operand.vmem [shape: f32[1,32], index: 6, kind: input, shape index: {}]   ;;  %s1543_s7 = inlined_call_operand.hbm [shape: f32[32,32], index: 7, kind: output, shape index: {}]  }
   0x1   :  { %14 = vsyncpa [#allocation3 + $0x1], 0  ;;  %s1221_s24 = smov 0   ;;  %s1223_s25 = smov 0  }
   0x2   :  { %s1225_s26 = smov 0   ;;  %s1227_s27 = smov 0  }
   0x3 LB: > { %s1242_s28 = sadd.s32 4294967295, %s1172_s27   ;;  %s989_s29 = sadd.s32 4294967294, %s1172_s27   ;;  %s1172_s27 = sphi %s1227_s27, %s1549_s27   ;;  %s1168_s26 = sphi %s1225_s26, %s1548_s26   ;;  %s1164_s25 = sphi %s1223_s25, %s1547_s25   ;;  %s1160_s24 = sphi %s1221_s24, %s1546_s24  }
   0x4   : > { %s1246_s30 = sadd.s32 1, %s1172_s27   ;;  %s184_s8 = sadd.s32 1, %s1168_s26 }
   0x5   : > { %s181_s9 = ssub.s32 %s1172_s27, %s1246_s30  ;;  %p194_p0 = scmp.ne.s32.totalorder %s1168_s26, %s1164_s25 }
   0x6   : > { %p182_p1 = scmp.eq.s32.totalorder %s181_s9, 0  ;;  %p195_p2 = scmp.eq.s32.totalorder %s1242_s28, 1 }
   0x7   : > { %p200_p3 = scmp.ne.s32.totalorder %s1164_s25, %s1160_s24  ;;  %p201_p4 = scmp.eq.s32.totalorder %s989_s29, 1 }
   0x8   : > { %s1257_s10 = scalar_select %p182_p1, %s1168_s26, %s184_s8  }
   0x9   : > { %p1259_p5 = por %p195_p2, %p194_p0  ;;  %p1263_p6 = por %p201_p4, %p200_p3 }
   0xa   : > { %p992_p7 = scmp.ge.s32.totalorder %s1172_s27, 1  ;;  %p250_p8 = scmp.lt.s32.totalorder %s1172_s27, 3 }
   0xc   : > { %p251_p9 = pnand %p992_p7, %p250_p8 }
   0xd   : > { %p287_p10 = scmp.lt.s32.totalorder (!%p251_p9), %s1242_s28, 1  ;;  %s1174_s14 = smov (!%p251_p9), 96  }
   0xe   : > { %254 = sbr.rel (%p251_p9) target bundleno = 1149 (0x47d), region = 48  ;;  %s1177_s18 = smov (!%p251_p9), 64  }
   0xf   : > { %s1178_s20 = smov (!%p251_p9), 32   ;;  %s284_s16 = sand.u32 (!%p251_p9), 1, %s1164_s25  }
  0x10   : > { %s993_s17 = sshll.u32 (!%p251_p9), %s284_s16, 4  ;;  %s1025_s23 = sshll.u32 (!%p251_p9), %s1242_s28, 4 }
  0x11   : > { %s286_s21 = scalar_lea.vmem (!%p251_p9), [#allocation2], %s993_s17  ;;  %s900_s13 = scalar_lea.sflag (!%p251_p9), [#allocation3], %s284_s16 }
  0x13   : > { %v303_v0 = vld [vmem:[%s1538_s2 + $0x18] sm:$0xff]  ;;  %v302_v1 = vld [vmem:[%s1538_s2 + $0x10] sm:$0xff]  ;;  %v301_v2 = vld [vmem:[%s1538_s2 + $0x8] sm:$0xff]  ;;  %s1280_s19 = scalar_select %p287_p10, %s1242_s28, 1  ;;  %vm308_vm0 = vcmask 261120   ;;  %vm447_vm1 = vcmask 130048  }
  0x14   : > { %327 = vmatpush.msra.mxu0 %v303_v0  ;;  %v300_v3 = vld [vmem:[%s1538_s2] sm:$0xff]  ;;  %v340_v13 = vld [vmem:[%s1540_s4 + $0x10] sm:$0xff]  ;;  %v339_v17 = vld [vmem:[%s1540_s4 + $0x8] sm:$0xff]  ;;  %vm602_vm2 = vcmask 1047556   ;;  %vm848_vm3 = vcmask 523264   ;;  %vm851_vm4 = vcmask 785408  }
  0x15   : > { %s1023_s22 = sshll.u32 %s1280_s19, 4  ;;  %v1076_v7 = vld [vmem:[%s1539_s3] ss:$0 sm:$0xff]  ;;  %v341_v18 = vld [vmem:[%s1540_s4 + $0x18] sm:$0xff]  ;;  %v343_v23 = vld [vmem:[%s1540_s4 + $0x28] sm:$0xff] }
  0x16   : > { %328 = vmatpush.msra.mxu0 %v302_v1  ;;  %s291_s8 = scalar_lea.vmem %s1536_s0, %s1023_s22  ;;  %v338_v12 = vld [vmem:[%s1540_s4] sm:$0xff]  ;;  %v344_v25 = vld [vmem:[%s1540_s4 + $0x30] sm:$0xff]  ;;  %v345_v27 = vld [vmem:[%s1540_s4 + $0x38] sm:$0xff]  ;;  %s296_s29 = scalar_lea.vmem %s1537_s1, %s1023_s22 }
  0x17   : > { %v298_v4 = vld [vmem:[%s291_s8] sm:$0xff]  ;;  %v299_v5 = vld [vmem:[%s291_s8 + $0x8] sm:$0xff]  ;;  %s911_s22 = scalar_lea.hbm %s1543_s7, %s1025_s23  ;;  %s912_s8 = sshll.u32 %s286_s21, 4  ;;  %s913_s8 = int_to_ptr.vmem [resolvable:$true] %s912_s8 }
  0x18   : > { %329 = vmatpush.msra.mxu0 %v301_v2  ;;  %1028 = vmatpush.msra.mxu2 %v299_v5  ;;  %v342_v21 = vld [vmem:[%s1540_s4 + $0x20] sm:$0xff]  ;;  %v438_v33 = vld [vmem:[%s296_s29 + $0x8] sm:$0xff]  ;;  %s914_s9 = sshll.u32 %s911_s22, 4  ;;  %s915_s9 = int_to_ptr.hbm [resolvable:$true] %s914_s9 }
  0x19   : > { %v437_v41 = vld [vmem:[%s296_s29] sm:$0xff] }
  0x1a   : > { %330 = vmatpush.msra.mxu0 %v300_v3  ;;  %1029 = vmatpush.msra.mxu2 %v298_v4 }
  0x1b   : > { %998 = vmatmul.msk.f32.vlgmr.msra.gmra.mxu0 %vm308_vm0, %v298_v4 }
  0x23   : > { %999 = vmatmul.msk.f32.gmra.mxu0 %vm308_vm0, %v299_v5 }
  0x98   : > { %v332_v6 = vpop.f32.mrf.mxu0 }
  0x99   : > { %v333_v10 = vadd.f32 %v1076_v7, %v332_v6 }
  0x9b   : > { %v346_v15 = vmul.f32 %v338_v12, %v333_v10  ;;  %v348_v16 = vmul.f32 %v340_v13, %v333_v10  ;;  %v350_v22 = vmul.f32 %v342_v21, %v333_v10  ;;  %v352_v26 = vmul.f32 %v344_v25, %v333_v10 }
  0xa0   : > { %v335_v8 = vpop.f32.mrf.mxu0 }
  0xa1   : > { %v336_v9 = vadd.f32 %v1076_v7, %v335_v8 }
  0xa3   : > { %358 = vrot.lane.b32.xlu0 %v336_v9, %s1174_s14  ;;  %v347_v19 = vmul.f32 %v339_v17, %v336_v9  ;;  %v349_v20 = vmul.f32 %v341_v18, %v336_v9  ;;  %v351_v24 = vmul.f32 %v343_v23, %v336_v9  ;;  %v353_v28 = vmul.f32 %v345_v27, %v336_v9 }
  0xab   : > { %356 = vrot.lane.b32.xlu0 %v333_v10, %s1174_s14 }
 0x115   : > { %v359_v11 = vpop.permute.xlu0 %358 }
 0x116   : > { %1000 = vmatpush.xpose.msk.msrb.mxu0 %vm308_vm0, %v359_v11  ;;  %1026 = vmatpush.xpose.msk.msra.mxu1 %vm308_vm0, %v359_v11 }
 0x11d   : > { %v357_v14 = vpop.permute.xlu0 %356 }
 0x11e   : > { %1001 = vmatpush.xpose.msk.msrb.mxu0 %vm308_vm0, %v357_v14  ;;  %1027 = vmatpush.xpose.msk.msra.mxu1 %vm308_vm0, %v357_v14 }
 0x121   : > { %1002 = vmatmul.msk.f32.vlgmr.msrb.gmra.mxu0 %vm308_vm0, %v346_v15  ;;  %1004 = vmatmul.msk.f32.vlgmr.msra.gmra.mxu1 %vm308_vm0, %v348_v16 }
 0x122   : > { %574 = vmatpush.msra.mxu0 %v299_v5 }
 0x124   : > { %575 = vmatpush.msra.mxu0 %v298_v4 }
 0x129   : > { %1003 = vmatmul.msk.f32.gmra.mxu0 %vm308_vm0, %v347_v19  ;;  %1005 = vmatmul.msk.f32.gmra.mxu1 %vm308_vm0, %v349_v20 }
 0x131   : > { %1006 = vmatmul.msk.f32.gmra.mxu1 %vm308_vm0, %v350_v22 }
 0x139   : > { %1007 = vmatmul.msk.f32.gmra.mxu1 %vm308_vm0, %v351_v24 }
 0x141   : > { %1008 = vmatmul.msk.f32.gmra.mxu1 %vm308_vm0, %v352_v26 }
 0x149   : > { %1009 = vmatmul.msk.f32.gmra.mxu1 %vm308_vm0, %v353_v28 }
 0x19e   : > { %v405_v29 = vpop.f32.mrf.mxu0  ;;  %v411_v30 = vpop.f32.mrf.mxu1 }
 0x19f   : > { %v431_v38 = vmul.f32 0.35355338, %v411_v30  ;;  %v429_v46 = vmul.f32 0.35355338, %v405_v29 }
 0x1a1   : > { %v441_v44 = vadd.f32 %v437_v41, %v431_v38  ;;  %v439_v51 = vadd.f32 %v437_v41, %v429_v46 }
 0x1a3   : > { %v454_v48 = vsel %vm447_vm1, %v441_v44, -inf  ;;  %v448_v54 = vsel %vm447_vm1, %v439_v51, -inf }
 0x1a6   : > { %v408_v31 = vpop.f32.mrf.mxu0  ;;  %v414_v32 = vpop.f32.mrf.mxu1 }
 0x1a7   : > { %v430_v34 = vmul.f32 0.35355338, %v408_v31  ;;  %v432_v35 = vmul.f32 0.35355338, %v414_v32 }
 0x1a9   : > { %v442_v36 = vadd.f32 %v438_v33, %v432_v35  ;;  %v440_v37 = vadd.f32 %v438_v33, %v430_v34 }
 0x1ab   : > { %v457_v39 = vsel %vm447_vm1, %v442_v36, -inf  ;;  %v451_v40 = vsel %vm447_vm1, %v440_v37, -inf }
 0x1ac   : > { %458 = vmax.xlane.f32.xlu2 %v457_v39  ;;  %452 = vmax.xlane.f32.xlu1 %v451_v40 }
 0x1ae   : > { %v417_v42 = vpop.f32.mrf.mxu1 }
 0x1af   : > { %v433_v43 = vmul.f32 0.35355338, %v417_v42 }
 0x1b1   : > { %v443_v45 = vadd.f32 %v437_v41, %v433_v43 }
 0x1b3   : > { %v460_v47 = vsel %vm447_vm1, %v443_v45, -inf }
 0x1b4   : > { %461 = vmax.xlane.f32.xlu2 %v460_v47  ;;  %455 = vmax.xlane.f32.xlu1 %v454_v48 }
 0x1b6   : > { %v420_v49 = vpop.f32.mrf.mxu1 }
 0x1b7   : > { %v434_v50 = vmul.f32 0.35355338, %v420_v49 }
 0x1b9   : > { %v444_v52 = vadd.f32 %v438_v33, %v434_v50 }
 0x1bb   : > { %v463_v53 = vsel %vm447_vm1, %v444_v52, -inf }
 0x1bc   : > { %464 = vmax.xlane.f32.xlu0 %v463_v53  ;;  %449 = vmax.xlane.f32.xlu2 %v448_v54 }
 0x1be   : > { %v423_v55 = vpop.f32.mrf.mxu1 }
 0x1bf   : > { %v435_v56 = vmul.f32 0.35355338, %v423_v55 }
 0x1c1   : > { %v445_v57 = vadd.f32 %v437_v41, %v435_v56 }
 0x1c3   : > { %v466_v58 = vsel %vm447_vm1, %v445_v57, -inf }
 0x1c4   : > { %467 = vmax.xlane.f32.xlu1 %v466_v58 }
 0x1c6   : > { %v426_v59 = vpop.f32.mrf.mxu1 }
 0x1c7   : > { %v436_v60 = vmul.f32 0.35355338, %v426_v59 }
 0x1c9   : > { %v446_v61 = vadd.f32 %v438_v33, %v436_v60 }
 0x1cb   : > { %v469_v62 = vsel %vm447_vm1, %v446_v61, -inf }
 0x1cc   : > { %470 = vmax.xlane.f32.xlu1 %v469_v62 }
 0x21f   : > { %v459_v63 = vpop.xlane.xlu2 %458  ;;  %v453_v0 = vpop.xlane.xlu1 %452 }
 0x220   : > { %v473_v1 = vsub.f32 %v440_v37, %v453_v0  ;;  %v475_v3 = vsub.f32 %v442_v36, %v459_v63 }
 0x222   : > { %v482_v2 = vmul.f32 1.442695, %v473_v1  ;;  %v486_v4 = vmul.f32 1.442695, %v475_v3 }
 0x224   : > { %1078 = vpow2.f32 %v482_v2 }
 0x225   : > { %1080 = vpow2.f32 %v486_v4  ;;  %v1175_v4 = vmov 1983009808  }
 0x227   : > { %v462_v5 = vpop.xlane.xlu2 %461  ;;  %v456_v6 = vpop.xlane.xlu1 %455 }
 0x228   : > { %v474_v7 = vsub.f32 %v441_v44, %v456_v6  ;;  %v476_v10 = vsub.f32 %v443_v45, %v462_v5  ;;  %v607_v5 = vunpack.c.l.s4 %v1175_v4 }
 0x22a   : > { %v484_v8 = vmul.f32 1.442695, %v474_v7  ;;  %v1079_v9 = vpop.eup %1078  ;;  %v488_v12 = vmul.f32 1.442695, %v476_v10 }
 0x22b   : > { %v499_v11 = vsel %vm447_vm1, %v1079_v9, 0.0  ;;  %v1081_v16 = vpop.eup %1080 }
 0x22c   : > { %1082 = vpow2.f32 %v484_v8  ;;  %500 = vadd.xlane.f32.xlu2 %v499_v11  ;;  %v505_v20 = vsel %vm447_vm1, %v1081_v16, 0.0 }
 0x22d   : > { %1084 = vpow2.f32 %v488_v12 }
 0x22f   : > { %v465_v13 = vpop.xlane.xlu0 %464  ;;  %v450_v15 = vpop.xlane.xlu2 %449 }
 0x230   : > { %v477_v14 = vsub.f32 %v444_v52, %v465_v13  ;;  %v472_v19 = vsub.f32 %v439_v51, %v450_v15  ;;  %v1176_v13 = vmov 1934713408  }
 0x232   : > { %v490_v17 = vmul.f32 1.442695, %v477_v14  ;;  %v1083_v18 = vpop.eup %1082  ;;  %v480_v22 = vmul.f32 1.442695, %v472_v19  ;;  %v631_v14 = vunpack.c.l.s4 %v1176_v13 }
 0x233   : > { %v502_v21 = vsel %vm447_vm1, %v1083_v18, 0.0  ;;  %v1085_v25 = vpop.eup %1084 }
 0x234   : > { %1086 = vpow2.f32 %v490_v17  ;;  %506 = vadd.xlane.f32.xlu2 %v505_v20  ;;  %503 = vadd.xlane.f32.xlu1 %v502_v21  ;;  %v508_v29 = vsel %vm447_vm1, %v1085_v25, 0.0 }
 0x235   : > { %1088 = vpow2.f32 %v480_v22 }
 0x237   : > { %v468_v23 = vpop.xlane.xlu1 %467 }
 0x238   : > { %v478_v24 = vsub.f32 %v445_v57, %v468_v23 }
 0x23a   : > { %v1087_v26 = vpop.eup %1086  ;;  %v492_v27 = vmul.f32 1.442695, %v478_v24  ;;  %v1372_v24 = vunpack.c.0.s8 %v631_v14  ;;  %v866_v14 = vld [vmem:[%s1541_s5 + $0x60] sm:$0xff] }
 0x23b   : > { %v511_v28 = vsel %vm447_vm1, %v1087_v26, 0.0  ;;  %v1089_v32 = vpop.eup %1088 }
 0x23c   : > { %1090 = vpow2.f32 %v492_v27  ;;  %512 = vadd.xlane.f32.xlu2 %v511_v28  ;;  %509 = vadd.xlane.f32.xlu1 %v508_v29  ;;  %v496_v36 = vsel %vm447_vm1, %v1089_v32, 0.0 }
 0x23f   : > { %v471_v30 = vpop.xlane.xlu1 %470 }
 0x240   : > { %v479_v31 = vsub.f32 %v446_v61, %v471_v30 }
 0x242   : > { %v1091_v33 = vpop.eup %1090  ;;  %v494_v34 = vmul.f32 1.442695, %v479_v31 }
 0x243   : > { %v514_v35 = vsel %vm447_vm1, %v1091_v33, 0.0 }
 0x244   : > { %1092 = vpow2.f32 %v494_v34  ;;  %497 = vadd.xlane.f32.xlu2 %v496_v36  ;;  %515 = vadd.xlane.f32.xlu1 %v514_v35 }
 0x24a   : > { %v1093_v37 = vpop.eup %1092 }
 0x24b   : > { %v517_v38 = vsel %vm447_vm1, %v1093_v37, 0.0 }
 0x24c   : > { %518 = vadd.xlane.f32.xlu1 %v517_v38 }
 0x29f   : > { %v501_v39 = vpop.xlane.xlu2 %500 }
 0x2a0   : > { %1094 = vrcp.f32 %v501_v39 }
 0x2a6   : > { %v1095_v40 = vpop.eup %1094 }
 0x2a7   : > { %v507_v41 = vpop.xlane.xlu2 %506  ;;  %v504_v42 = vpop.xlane.xlu1 %503  ;;  %v529_v43 = vmul.f32 %v1095_v40, %v1079_v9  ;;  %v1363_v9 = vunpack.c.0.s8 %v607_v5  ;;  %v867_v5 = vld [vmem:[%s1541_s5 + $0x68] sm:$0xff] }
 0x2a8   : > { %1096 = vrcp.f32 %v504_v42 }
 0x2a9   : > { %1011 = vmatmul.msk.f32.vlgmr.msra.gmra.mxu2 %vm447_vm1, %v529_v43  ;;  %1098 = vrcp.f32 %v507_v41 }
 0x2ae   : > { %v1097_v44 = vpop.eup %1096 }
 0x2af   : > { %v513_v45 = vpop.xlane.xlu2 %512  ;;  %v530_v46 = vmul.f32 %v1097_v44, %v1083_v18  ;;  %v510_v47 = vpop.xlane.xlu1 %509 }
 0x2b0   : > { %v1099_v48 = vpop.eup %1098  ;;  %1100 = vrcp.f32 %v510_v47 }
 0x2b1   : > { %1012 = vmatmul.msk.f32.gmra.mxu2 %vm447_vm1, %v530_v46  ;;  %v531_v50 = vmul.f32 %v1099_v48, %v1081_v16 }
 0x2b6   : > { %v1101_v51 = vpop.eup %1100 }
 0x2b7   : > { %v498_v49 = vpop.xlane.xlu2 %497  ;;  %v532_v54 = vmul.f32 %v1101_v51, %v1085_v25  ;;  %v516_v55 = vpop.xlane.xlu1 %515 }
 0x2b8   : > { %1102 = vrcp.f32 %v498_v49 }
 0x2b9   : > { %1013 = vmatmul.msk.f32.gmra.mxu2 %vm447_vm1, %v531_v50  ;;  %1104 = vrcp.f32 %v513_v45 }
 0x2ba   : > { %1106 = vrcp.f32 %v516_v55 }
 0x2be   : > { %v1103_v52 = vpop.eup %1102 }
 0x2bf   : > { %v528_v53 = vmul.f32 %v1103_v52, %v1089_v32  ;;  %v1105_v56 = vpop.eup %1104  ;;  %v519_v58 = vpop.xlane.xlu1 %518 }
 0x2c0   : > { %v533_v57 = vmul.f32 %v1105_v56, %v1087_v26  ;;  %v1107_v59 = vpop.eup %1106  ;;  %1108 = vrcp.f32 %v519_v58  ;;  %v869_v58 = vld [vmem:[%s1541_s5 + $0x78] sm:$0xff] }
 0x2c1   : > { %1010 = vmatmul.msk.f32.vlgmr.msra.gmra.mxu0 %vm447_vm1, %v528_v53  ;;  %1014 = vmatmul.msk.f32.gmra.mxu2 %vm447_vm1, %v532_v54  ;;  %v534_v60 = vmul.f32 %v1107_v59, %v1091_v33  ;;  %v868_v59 = vld [vmem:[%s1541_s5 + $0x70] sm:$0xff] }
 0x2c2   : > { %874 = vmatpush.msra.mxu3 %v869_v58 }
 0x2c4   : > { %875 = vmatpush.msra.mxu3 %v868_v59 }
 0x2c6   : > { %v1109_v61 = vpop.eup %1108  ;;  %876 = vmatpush.msra.mxu3 %v867_v5 }
 0x2c7   : > { %v535_v62 = vmul.f32 %v1109_v61, %v1093_v37 }
 0x2c8   : > { %877 = vmatpush.msra.mxu3 %v866_v14 }
 0x2c9   : > { %1015 = vmatmul.msk.f32.gmra.mxu2 %vm447_vm1, %v533_v57 }
 0x2d1   : > { %1016 = vmatmul.msk.f32.gmra.mxu2 %vm447_vm1, %v534_v60 }
 0x2d9   : > { %1017 = vmatmul.msk.f32.gmra.mxu2 %vm447_vm1, %v535_v62 }
 0x32c   : > { %v580_v63 = vpop.f32.mrf.mxu2 }
 0x32d   : > { %v660_v15 = vrot.slane %v580_v63, 4 }
 0x334   : > { %v583_v0 = vpop.f32.mrf.mxu2 }
 0x335   : > { %v616_v17 = vrot.slane %v583_v0, 4 }
 0x33c   : > { %v586_v1 = vpop.f32.mrf.mxu2 }
 0x33d   : > { %v672_v41 = vrot.slane %v586_v1, 4 }
 0x33e   : > { %v577_v3 = vpop.f32.mrf.mxu0 }
 0x33f   : > { %v604_v8 = vrot.slane %v577_v3, 4 }
 0x344   : > { %v589_v2 = vpop.f32.mrf.mxu2 }
 0x345   : > { %v601_v6 = vrot.slane %v589_v2, 4  ;;  %v605_v10 = vsel %vm602_vm2, %v589_v2, %v604_v8 }
 0x346   : > { %v613_v16 = vperm.slane %v605_v10, %v1363_v9 }
 0x347   : > { %v603_v11 = vsel %vm602_vm2, %v601_v6, %v577_v3 }
 0x348   : > { %v609_v18 = vperm.slane %v603_v11, %v1363_v9  ;;  %v640_v25 = vrot.slane %v613_v16, 4 }
 0x34a   : > { %v628_v27 = vrot.slane %v609_v18, 4 }
 0x34c   : > { %v592_v7 = vpop.f32.mrf.mxu2 }
 0x34d   : > { %v658_v12 = vrot.slane %v592_v7, 4  ;;  %v661_v19 = vsel %vm602_vm2, %v592_v7, %v660_v15 }
 0x34e   : > { %v669_v28 = vperm.slane %v661_v19, %v1363_v9 }
 0x34f   : > { %v659_v21 = vsel %vm602_vm2, %v658_v12, %v580_v63 }
 0x350   : > { %v665_v30 = vperm.slane %v659_v21, %v1363_v9  ;;  %v696_v43 = vrot.slane %v669_v28, 4 }
 0x352   : > { %v684_v42 = vrot.slane %v665_v30, 4 }
 0x354   : > { %v595_v20 = vpop.f32.mrf.mxu2 }
 0x355   : > { %v614_v22 = vrot.slane %v595_v20, 4  ;;  %v617_v23 = vsel %vm602_vm2, %v595_v20, %v616_v17 }
 0x356   : > { %v625_v26 = vperm.slane %v617_v23, %v1363_v9 }
 0x357   : > { %v615_v29 = vsel %vm602_vm2, %v614_v22, %v583_v0 }
 0x358   : > { %v621_v31 = vperm.slane %v615_v29, %v1363_v9  ;;  %v638_v32 = vrot.slane %v625_v26, 4  ;;  %v641_v33 = vsel %vm602_vm2, %v625_v26, %v640_v25 }
 0x359   : > { %v649_v34 = vperm.slane %v641_v33, %v1372_v24 }
 0x35a   : > { %v626_v35 = vrot.slane %v621_v31, 4  ;;  %v629_v36 = vsel %vm602_vm2, %v621_v31, %v628_v27  ;;  %v639_v37 = vsel %vm602_vm2, %v638_v32, %v613_v16 }
 0x35b   : > { %v637_v38 = vperm.slane %v629_v36, %v1372_v24  ;;  %v645_v39 = vperm.slane %v639_v37, %v1372_v24  ;;  %v656_v40 = vrot.slane %v649_v34, 4 }
 0x35c   : > { %v627_v44 = vsel %vm602_vm2, %v626_v35, %v609_v18  ;;  %v598_v45 = vpop.f32.mrf.mxu2 }
 0x35d   : > { %v633_v46 = vperm.slane %v627_v44, %v1372_v24  ;;  %v652_v47 = vrot.slane %v637_v38, 4  ;;  %v654_v48 = vrot.slane %v645_v39, 4  ;;  %v657_v49 = vsel %vm602_vm2, 0.0, %v656_v40 }
 0x35e   : > { %v725_v50 = vsel %vm602_vm2, %v656_v40, %v645_v39  ;;  %v730_v51 = vrot.slane %v657_v49, 4  ;;  %v670_v52 = vrot.slane %v598_v45, 4  ;;  %v673_v53 = vsel %vm602_vm2, %v598_v45, %v672_v41 }
 0x35f   : > { %v650_v54 = vrot.slane %v633_v46, 4  ;;  %v653_v55 = vsel %vm602_vm2, 0.0, %v652_v47  ;;  %v655_v56 = vsel %vm602_vm2, 0.0, %v654_v48  ;;  %v729_v57 = vperm.slane %v725_v50, %v1363_v9 }
 0x360   : > { %v719_v60 = vrot.slane %v653_v55, 4  ;;  %v671_v61 = vsel %vm602_vm2, %v670_v52, %v586_v1  ;;  %v681_v62 = vperm.slane %v673_v53, %v1363_v9  ;;  %v714_v63 = vsel %vm602_vm2, %v652_v47, %v633_v46 }
 0x361   : > { %v677_v0 = vperm.slane %v671_v61, %v1363_v9  ;;  %v651_v2 = vsel %vm602_vm2, 0.0, %v650_v54  ;;  %v718_v3 = vperm.slane %v714_v63, %v1363_v9  ;;  %v731_v4 = vsel %vm602_vm2, %v730_v51, %v655_v56 }
 0x362   : > { %v694_v6 = vrot.slane %v681_v62, 4  ;;  %v697_v1 = vsel %vm602_vm2, %v681_v62, %v696_v43  ;;  %v720_v7 = vsel %vm602_vm2, %v719_v60, %v651_v2  ;;  %v735_v8 = vperm.slane %v731_v4, %v1363_v9 }
 0x363   : > { %v682_v10 = vrot.slane %v677_v0, 4  ;;  %v685_v11 = vsel %vm602_vm2, %v677_v0, %v684_v42  ;;  %v705_v12 = vperm.slane %v697_v1, %v1372_v24  ;;  %v724_v13 = vperm.slane %v720_v7, %v1363_v9 }
 0x364   : > { %v693_v15 = vperm.slane %v685_v11, %v1372_v24  ;;  %v695_v16 = vsel %vm602_vm2, %v694_v6, %v669_v28  ;;  %v738_v17 = vrot.slane %v718_v3, 4  ;;  %v750_v18 = vrot.slane %v729_v57, 4 }
 0x365   : > { %v683_v19 = vsel %vm602_vm2, %v682_v10, %v665_v30  ;;  %v701_v20 = vperm.slane %v695_v16, %v1372_v24  ;;  %v712_v21 = vrot.slane %v705_v12, 4  ;;  %v736_v22 = vrot.slane %v724_v13, 4  ;;  %v863_v16 = vld [vmem:[%s1541_s5 + $0x48] sm:$0xff] }
 0x366   : > { %v689_v23 = vperm.slane %v683_v19, %v1372_v24  ;;  %v708_v25 = vrot.slane %v693_v15, 4  ;;  %v739_v26 = vsel %vm602_vm2, %v724_v13, %v738_v17  ;;  %v751_v27 = vsel %vm602_vm2, %v735_v8, %v750_v18  ;;  %v865_v15 = vld [vmem:[%s1541_s5 + $0x58] sm:$0xff]  ;;  %v862_v17 = vld [vmem:[%s1541_s5 + $0x40] sm:$0xff]  ;;  %v860_v19 = vld [vmem:[%s1541_s5 + $0x30] sm:$0xff] }
 0x367   : > { %v710_v29 = vrot.slane %v701_v20, 4  ;;  %v713_v28 = vsel %vm602_vm2, 0.0, %v712_v21  ;;  %v779_v31 = vsel %vm602_vm2, %v712_v21, %v701_v20  ;;  %v747_v32 = vperm.slane %v739_v26, %v1372_v24  ;;  %878 = vmatpush.msra.mxu3 %v865_v15  ;;  %v861_v18 = vld [vmem:[%s1541_s5 + $0x38] sm:$0xff]  ;;  %v859_v20 = vld [vmem:[%s1541_s5 + $0x28] sm:$0xff]  ;;  %v858_v21 = vld [vmem:[%s1541_s5 + $0x20] sm:$0xff] }
 0x368   : > { %v706_v30 = vrot.slane %v689_v23, 4  ;;  %v709_v33 = vsel %vm602_vm2, 0.0, %v708_v25  ;;  %v783_v34 = vperm.slane %v779_v31, %v1363_v9  ;;  %v784_v35 = vrot.slane %v713_v28, 4  ;;  %v854_v26 = vld [vmem:[%s1541_s5] sm:$0xff] }
 0x369   : > { %v711_v36 = vsel %vm602_vm2, 0.0, %v710_v29  ;;  %v773_v37 = vrot.slane %v709_v33, 4  ;;  %v759_v38 = vperm.slane %v751_v27, %v1372_v24  ;;  %v766_v39 = vrot.slane %v747_v32, 4 }
 0x36a   : > { %v737_v40 = vsel %vm602_vm2, %v736_v22, %v718_v3  ;;  %v748_v41 = vrot.slane %v735_v8, 4  ;;  %v707_v42 = vsel %vm602_vm2, 0.0, %v706_v30  ;;  %v768_v43 = vsel %vm602_vm2, %v708_v25, %v689_v23  ;;  %v857_v22 = vld [vmem:[%s1541_s5 + $0x18] sm:$0xff]  ;;  %v856_v23 = vld [vmem:[%s1541_s5 + $0x10] sm:$0xff]  ;;  %v855_v25 = vld [vmem:[%s1541_s5 + $0x8] sm:$0xff] }
 0x36b   : > { %v764_v44 = vrot.slane %v759_v38, 4  ;;  %v767_v45 = vsel %vm602_vm2, %v759_v38, %v766_v39  ;;  %v743_v46 = vperm.slane %v737_v40, %v1372_v24  ;;  %v772_v47 = vperm.slane %v768_v43, %v1363_v9  ;;  %v1077_v39 = vld [vmem:[%s1542_s6] ss:$0 sm:$0xff] }
 0x36c   : > { %840 = vrot.lane.b32.xlu1 %v767_v45, %s1174_s14  ;;  %v749_v48 = vsel %vm602_vm2, %v748_v41, %v729_v57  ;;  %v774_v49 = vsel %vm602_vm2, %v773_v37, %v707_v42  ;;  %v785_v50 = vsel %vm602_vm2, %v784_v35, %v711_v36  ;;  %v804_v51 = vrot.slane %v783_v34, 4 }
 0x36d   : > { %v765_v52 = vsel %vm602_vm2, %v764_v44, %v747_v32  ;;  %v755_v53 = vperm.slane %v749_v48, %v1372_v24  ;;  %v762_v54 = vrot.slane %v743_v46, 4  ;;  %v778_v55 = vperm.slane %v774_v49, %v1363_v9 }
 0x36e   : > { %832 = vrot.lane.b32.xlu0 %v765_v52, %s1177_s18  ;;  %v789_v56 = vperm.slane %v785_v50, %v1363_v9  ;;  %v792_v58 = vrot.slane %v772_v47, 4 }
 0x36f   : > { %v760_v59 = vrot.slane %v755_v53, 4  ;;  %v763_v57 = vsel %vm602_vm2, %v755_v53, %v762_v54  ;;  %v790_v60 = vrot.slane %v778_v55, 4 }
 0x370   : > { %824 = vrot.lane.b32.xlu2 %v763_v57, %s1178_s20  ;;  %v793_v61 = vsel %vm602_vm2, %v778_v55, %v792_v58  ;;  %v805_v62 = vsel %vm602_vm2, %v789_v56, %v804_v51  ;;  %v802_v63 = vrot.slane %v789_v56, 4 }
 0x371   : > { %v813_v0 = vperm.slane %v805_v62, %v1372_v24  ;;  %v791_v2 = vsel %vm602_vm2, %v790_v60, %v772_v47  ;;  %v761_v3 = vsel %vm602_vm2, %v760_v59, %v743_v46  ;;  %v801_v5 = vperm.slane %v793_v61, %v1372_v24 }
 0x372   : > { %v797_v9 = vperm.slane %v791_v2, %v1372_v24  ;;  %v803_v4 = vsel %vm602_vm2, %v802_v63, %v783_v34 }
 0x373   : > { %v818_v6 = vrot.slane %v813_v0, 4  ;;  %v809_v1 = vperm.slane %v803_v4, %v1372_v24  ;;  %v820_v13 = vrot.slane %v801_v5, 4  ;;  %v864_v24 = vld [vmem:[%s1541_s5 + $0x50] sm:$0xff] }
 0x374   : > { %v816_v7 = vrot.slane %v797_v9, 4  ;;  %879 = vmatpush.msra.mxu3 %v864_v24 }
 0x375   : > { %v814_v8 = vrot.slane %v809_v1, 4  ;;  %v819_v11 = vsel %vm602_vm2, %v818_v6, %v801_v5  ;;  %v821_v14 = vsel %vm602_vm2, %v813_v0, %v820_v13 }
 0x376   : > { %v817_v10 = vsel %vm602_vm2, %v809_v1, %v816_v7  ;;  %880 = vmatpush.msra.mxu3 %v863_v16 }
 0x377   : > { %826 = vrot.lane.b32.xlu0 %v817_v10, %s1178_s20  ;;  %v815_v12 = vsel %vm602_vm2, %v814_v8, %v797_v9 }
 0x378   : > { %834 = vrot.lane.b32.xlu2 %v819_v11, %s1177_s18  ;;  %881 = vmatpush.msra.mxu3 %v862_v17  ;;  %s1130_s18 = scalar_lea.hbm %s1543_s7, 32 }
 0x37a   : > { %882 = vmatpush.msra.mxu3 %v861_v18 }
 0x37c   : > { %883 = vmatpush.msra.mxu3 %v860_v19 }
 0x37e   : > { %884 = vmatpush.msra.mxu3 %v859_v20 }
 0x37f   : > { %842 = vrot.lane.b32.xlu0 %v821_v14, %s1174_s14  ;;  %s1124_s14 = sshra.s32 %s915_s9, 4  ;;  %s1125_s14 = int_to_ptr.hbm [resolvable:$true] %s1124_s14 }
 0x380   : > { %885 = vmatpush.msra.mxu3 %v858_v21  ;;  %s1126_s15 = scalar_lea.hbm %s1125_s14, 16  ;;  %p1131_p0 = scmp.lt.s32.totalorder %s1125_s14, %s1543_s7 }
 0x381   : > { %p1127_p11 = scmp.ne.s32.totalorder %s1125_s14, %s1126_s15  ;;  %p1132_p1 = scmp.lt.s32.totalorder %s1130_s18, %s1126_s15 }
 0x382   : > { %886 = vmatpush.msra.mxu3 %v857_v22 }
 0x383   : > { %p1128_p12 = pnand %p1127_p11, %p1259_p5  ;;  %p1133_p2 = por %p1132_p1, %p1131_p0 }
 0x384   : > { %887 = vmatpush.msra.mxu3 %v856_v23 }
 0x385   : > { %p1129_p13 = pneg %p1128_p12 }
 0x386   : > { %888 = vmatpush.msra.mxu3 %v855_v25 }
 0x387   : > { %p1134_p3 = pnand %p1133_p2, %p1129_p13 }
 0x388   : > { %889 = vmatpush.msra.mxu3 %v854_v26 }
 0x3ca   : > { %v825_v27 = vpop.permute.xlu2 %824 }
 0x3cb   : > { %v846_v28 = vsel %vm308_vm0, %v761_v3, %v825_v27 }
 0x3d2   : > { %v835_v35 = vpop.permute.xlu2 %834 }
 0x3de   : > { %v841_v29 = vpop.permute.xlu1 %840 }
 0x3e0   : > { %v833_v31 = vpop.permute.xlu0 %832 }
 0x3e1   : > { %v849_v32 = vsel %vm848_vm3, %v846_v28, %v833_v31 }
 0x3e2   : > { %v852_v30 = vsel %vm851_vm4, %v849_v32, %v841_v29 }
 0x3e3   : > { %890 = vmatmul.f32.vlgmr.msra.gmra.mxu3 %v852_v30 }
 0x3e9   : > { %v827_v33 = vpop.permute.xlu0 %826 }
 0x3ea   : > { %v847_v34 = vsel %vm308_vm0, %v815_v12, %v827_v33 }
 0x3eb   : > { %v850_v37 = vsel %vm848_vm3, %v847_v34, %v835_v35 }
 0x3f1   : > { %v843_v36 = vpop.permute.xlu0 %842 }
 0x3f2   : > { %v853_v38 = vsel %vm851_vm4, %v850_v37, %v843_v36 }
 0x3f3   : > { %893 = vmatmul.f32.gmra.mxu3 %v853_v38 }
 0x466   : > { %v891_v40 = vpop.f32.mrf.mxu3 }
 0x467   : > { %v892_v41 = vadd.f32 %v1077_v39, %v891_v40 }
 0x469   : > { %897 = vst.msk [vmem:[%s286_s21] sm:$0xff] %vm308_vm0, %v892_v41 }
 0x476   : > { %v894_v42 = vpop.f32.mrf.mxu3 }
 0x477   : > { %v895_v43 = vadd.f32 %v1077_v39, %v894_v42 }
 0x479   : > { %898 = vst.msk [vmem:[%s286_s21 + $0x8] sm:$0xff] %vm308_vm0, %v895_v43 }
 0x47a   : > { %1137 = shalt.err (!%p1134_p3)
}
 0x47b   : > { %s1179_s16 = smov 128   ;;  %s1180_s21 = smov 8  }
 0x47c   : > { %1030 = dma.vmem_to_hbm [thread:$0]  (%p1259_p5), %s913_s8, 256, %s915_s9, %s900_s13, %s1179_s16, %s1179_s16, %s1180_s21  }
 0x47d PF: > { %p1036_p4 = scmp.ge.s32.totalorder %s1172_s27, 2  ;;  %s929_s29 = sand.u32 1, %s1160_s24  }
 0x47e   : > { %s930_s19 = scalar_lea.sflag [#allocation3], %s929_s29 }
 0x47f   : > { %p1033_p7 = pnand %p1036_p4, %p1263_p6 }
 0x481   : > { %p1034_p8 = pneg %p1033_p7 }
 0x483   : > { %1155 = dma.done.wait (%p1034_p8), %s930_s19, 256  }
 0x484   : > { %1157 = vsyncadd (%p1034_p8), %s930_s19, 4294967040  ;;  %p17_p9 = scmp.ge.s32.totalorder %s1246_s30, 4   ;;  %s1546_s24 = smov %s1164_s25 }
 0x485   : > { %s1547_s25 = smov %s1168_s26  ;;  %s1548_s26 = smov %s1257_s10 }
 0x486   : > { %s1549_s27 = smov %s1246_s30  ;;  %19 = sbr.rel (!%p17_p9) target bundleno = 3 (0x3), region = 86 }
 0x48b   :  { %936 = vsyncpa [#allocation3], 1 }
 0x48c   :  { %938 = vsyncpa [#allocation3 + $0x1], 1 }

</bundles_post_ra>
